<compile_context>
chip_gen: v7x
topology: tpu7x:2x2x1
jax: 0.10.0
libtpu: 0.0.40
codegen_flags: <defaults>
</compile_context>

<pallas_src>
import jax
import jax.numpy as jnp
from jax.experimental import pallas as pl
from jax.experimental.pallas import tpu as pltpu

# Output-slab column layout (lane-dense, 128 wide).
_OUT_W = 128
_COL_PREDICT = 0
_COL_VERT0 = 1      # 15 columns: 1..15
_COL_LOCAL = 16
_COL_POP0 = 17      # 4 columns: 17..20
_COL_I2I = 21

_ROW_TILE_TARGET = 1024     # rows = flattened (B * N)


def _round_up(x, m):
    return (x + m - 1) // m * m


# ----------------------------------------------------------------------------
# Kernel
# ----------------------------------------------------------------------------
def _kred_kernel(cand_ref, b1u_ref, uhat_ref, wc_ref, w2_ref, b2_ref, out_ref):
    out_w = out_ref.shape[-1]

    cand_lp = cand_ref[...]                     # [TN, D] bf16 (matmul operand)
    cand = cand_lp.astype(jnp.float32)          # f32 copy for cosine math

    # Fused first layer of all four heads. The user@wu contribution is folded
    # into the per-row bias b1u (precomputed in the wrapper), so only a single
    # MXU matmul against the candidate rows remains.
    h = jnp.dot(cand_lp, wc_ref[...], preferred_element_type=jnp.float32)
    h = jnp.maximum(h + b1u_ref[...], 0.0)      # ReLU, [TN, 4L] f32

    # Fused block-diagonal second layer: logits land directly in the
    # lane-dense output-slab column layout.
    logits = jnp.dot(h.astype(w2_ref.dtype), w2_ref[...],
                     preferred_element_type=jnp.float32) + b2_ref[...]  # [TN,128]

    # Grid-invariant column masks built at (1, 128); broadcast across sublanes.
    col = jax.lax.broadcasted_iota(jnp.int32, (1, out_w), 1)
    m_sig = (col == _COL_PREDICT) | (col == _COL_LOCAL)
    m_vert = (col >= _COL_VERT0) & (col < _COL_VERT0 + 15)
    m_pop = (col >= _COL_POP0) & (col < _COL_POP0 + 4)
    m_sm = m_vert | m_pop
    m_heads = m_sig | m_sm
    m_i2i = col == _COL_I2I

    # Single exp pass: softmax columns get (logits - head max), sigmoid
    # columns get (-logits), everything else gets -inf (exp -> 0).
    neg_inf = jnp.float32(-jnp.inf)
    mx_vert = jnp.max(jnp.where(m_vert, logits, neg_inf), axis=-1, keepdims=True)
    mx_pop = jnp.max(jnp.where(m_pop, logits, neg_inf), axis=-1, keepdims=True)
    shift = jnp.where(m_vert, mx_vert, mx_pop)
    arg = jnp.where(m_sig, -logits, jnp.where(m_sm, logits - shift, neg_inf))
    e = jnp.exp(arg)                             # [TN, 128]

    sum_vert = jnp.sum(jnp.where(m_vert, e, 0.0), axis=-1, keepdims=True)
    sum_pop = jnp.sum(jnp.where(m_pop, e, 0.0), axis=-1, keepdims=True)

    # Single divide pass: sigmoid columns use 1/(1+e), softmax columns e/sum.
    denom = jnp.where(m_sig, 1.0 + e, jnp.where(m_vert, sum_vert, sum_pop))
    inv = 1.0 / denom
    heads = jnp.where(m_sig, inv, e * inv)

    # Cosine similarity against the pre-normalized user row
    # (torch semantics with per-norm eps clamping; eps = 1e-8 -> eps^2 = 1e-16).
    uhat = uhat_ref[...]                                        # [TN, D] f32
    dotp = jnp.sum(uhat * cand, axis=-1, keepdims=True)         # [TN, 1]
    nc2 = jnp.sum(cand * cand, axis=-1, keepdims=True)          # [TN, 1]
    i2i = dotp * jax.lax.rsqrt(jnp.maximum(nc2, 1e-16))

    out_ref[...] = jnp.where(m_heads, heads, jnp.where(m_i2i, i2i, 0.0))


# ----------------------------------------------------------------------------
# Parameters (PyTorch Linear shapes, stored as (in_features, out_features))
# ----------------------------------------------------------------------------
def init_params(key, embedding_dim, layer_dim):
    ks = jax.random.split(key, 8)

    def lin(k, fan_in, fan_out):
        bound = 1.0 / jnp.sqrt(jnp.float32(fan_in))
        kw, kb = jax.random.split(k)
        w = jax.random.uniform(kw, (fan_in, fan_out), jnp.float32, -bound, bound)
        b = jax.random.uniform(kb, (1, fan_out), jnp.float32, -bound, bound)
        return w, b

    p = {}
    p["mlp1_w"], p["mlp1_b"] = lin(ks[0], 2 * embedding_dim, layer_dim)
    p["mlp2_w"], p["mlp2_b"] = lin(ks[1], layer_dim, 1)
    p["vert1_w"], p["vert1_b"] = lin(ks[2], embedding_dim, layer_dim)
    p["vert2_w"], p["vert2_b"] = lin(ks[3], layer_dim, 15)
    p["local1_w"], p["local1_b"] = lin(ks[4], embedding_dim, layer_dim)
    p["local2_w"], p["local2_b"] = lin(ks[5], layer_dim, 1)
    p["pop1_w"], p["pop1_b"] = lin(ks[6], embedding_dim, layer_dim)
    p["pop2_w"], p["pop2_b"] = lin(ks[7], layer_dim, 4)
    return p


def fuse_params(params, embedding_dim, layer_dim, matmul_dtype=jnp.bfloat16):
    """Param-prep-time fusion of the four heads into two lane-aligned matmuls.

    wu / b1 stay f32 (used only in the wrapper to build the per-row user bias);
    wc / w2 are stored in the MXU input dtype (bf16 by default).
    """
    D, L = embedding_dim, layer_dim
    H = 4 * L
    # First layer: user-path weight lives only in the predict-head columns.
    wu = jnp.zeros((D, H), jnp.float32).at[:, 0:L].set(params["mlp1_w"][:D])
    wc = jnp.concatenate([params["mlp1_w"][D:], params["vert1_w"],
                          params["local1_w"], params["pop1_w"]], axis=1)
    b1 = jnp.concatenate([params["mlp1_b"], params["vert1_b"],
                          params["local1_b"], params["pop1_b"]], axis=1)
    # Second layer: block-diagonal, columns placed in output-slab layout.
    w2 = jnp.zeros((H, _OUT_W), jnp.float32)
    w2 = w2.at[0 * L:1 * L, _COL_PREDICT:_COL_PREDICT + 1].set(params["mlp2_w"])
    w2 = w2.at[1 * L:2 * L, _COL_VERT0:_COL_VERT0 + 15].set(params["vert2_w"])
    w2 = w2.at[2 * L:3 * L, _COL_LOCAL:_COL_LOCAL + 1].set(params["local2_w"])
    w2 = w2.at[3 * L:4 * L, _COL_POP0:_COL_POP0 + 4].set(params["pop2_w"])
    b2 = jnp.zeros((1, _OUT_W), jnp.float32)
    b2 = b2.at[:, _COL_PREDICT:_COL_PREDICT + 1].set(params["mlp2_b"])
    b2 = b2.at[:, _COL_VERT0:_COL_VERT0 + 15].set(params["vert2_b"])
    b2 = b2.at[:, _COL_LOCAL:_COL_LOCAL + 1].set(params["local2_b"])
    b2 = b2.at[:, _COL_POP0:_COL_POP0 + 4].set(params["pop2_b"])
    return {"wu": wu, "b1": b1,
            "wc": wc.astype(matmul_dtype),
            "w2": w2.astype(matmul_dtype),
            "b2": b2}


# ----------------------------------------------------------------------------
# Wrapper
# ----------------------------------------------------------------------------
@jax.jit
def kred_forward(user_embedding, candidate_news_embedding, fused):
    """user_embedding: [B, D]; candidate_news_embedding: [B, N, D]."""
    B, N, D = candidate_news_embedding.shape
    H = fused["wc"].shape[1]
    R = B * N

    user = user_embedding.astype(jnp.float32)                  # [B, D]
    # Per-batch-row user contribution of the fused first layer, hoisted out of
    # the kernel (replaces an M=1 MXU matmul recomputed per candidate tile).
    b1u = user @ fused["wu"] + fused["b1"]                     # [B, 4L] f32
    # Pre-normalized user row: drops the nu2 reduction + one rsqrt per tile.
    unorm = jnp.sqrt(jnp.sum(user * user, axis=-1, keepdims=True))
    uhat = user / jnp.maximum(unorm, 1e-8)                     # [B, D] f32

    # Flatten (B, N) into one row axis so small-N impressions amortize the
    # fixed per-grid-step overhead; per-row user data rides along as b1u/uhat
    # (a few hundred bytes per row — negligible HBM traffic).
    cand_flat = candidate_news_embedding.reshape(R, D)
    if cand_flat.dtype != jnp.bfloat16:
        cand_flat = cand_flat.astype(jnp.bfloat16)             # bf16 MXU path
    b1u_flat = jnp.broadcast_to(b1u[:, None, :], (B, N, H)).reshape(R, H)
    uhat_flat = jnp.broadcast_to(uhat[:, None, :], (B, N, D)).reshape(R, D)

    tn = min(_ROW_TILE_TARGET, _round_up(R, 8))                # (8,128) rule
    r_pad = _round_up(R, tn)
    if r_pad != R:
        pad = ((0, r_pad - R), (0, 0))
        cand_flat = jnp.pad(cand_flat, pad)
        b1u_flat = jnp.pad(b1u_flat, pad)
        uhat_flat = jnp.pad(uhat_flat, pad)

    def const_spec(a):
        return pl.BlockSpec(a.shape, lambda r: (0,) * a.ndim)

    slab = pl.pallas_call(
        _kred_kernel,
        out_shape=jax.ShapeDtypeStruct((r_pad, _OUT_W), jnp.float32),
        grid_spec=pltpu.PrefetchScalarGridSpec(
            num_scalar_prefetch=0,
            grid=(r_pad // tn,),
            in_specs=[
                pl.BlockSpec((tn, D), lambda r: (r, 0)),       # candidate rows
                pl.BlockSpec((tn, H), lambda r: (r, 0)),       # per-row user bias
                pl.BlockSpec((tn, D), lambda r: (r, 0)),       # normalized user
                const_spec(fused["wc"]),
                const_spec(fused["w2"]),
                const_spec(fused["b2"]),
            ],
            out_specs=pl.BlockSpec((tn, _OUT_W), lambda r: (r, 0)),
        ),
        compiler_params=pltpu.CompilerParams(
            dimension_semantics=("parallel",)),
    )(cand_flat, b1u_flat, uhat_flat, fused["wc"], fused["w2"], fused["b2"])

    # Un-pad and split; this stays inside the same jit so XLA fuses the column
    # gathers with their consumers instead of re-streaming the slab from HBM.
    slab = slab[:R].reshape(B, N, _OUT_W)
    predict = slab[..., _COL_PREDICT]
    predict_vert = slab[..., _COL_VERT0:_COL_VERT0 + 15]
    predict_local = slab[..., _COL_LOCAL]
    predict_pop = slab[..., _COL_POP0:_COL_POP0 + 4]
    predict_i2i = slab[..., _COL_I2I]
    # torch .squeeze() semantics
    return (predict.squeeze(), predict_vert.squeeze(), predict_local.squeeze(),
            predict_pop.squeeze(), predict_i2i.squeeze())


# ----------------------------------------------------------------------------
# Pure-JAX references
# ----------------------------------------------------------------------------
def _sigmoid(x):
    return 1.0 / (1.0 + jnp.exp(-x))


def _cosine(user, cand, eps=1e-8):
    dot = jnp.sum(user * cand, axis=-1)
    nu = jnp.maximum(jnp.sqrt(jnp.sum(user * user, axis=-1)), eps)
    nc = jnp.maximum(jnp.sqrt(jnp.sum(cand * cand, axis=-1)), eps)
    return dot / (nu * nc)


def _reference_fused(user_embedding, cand, fused):
    """Same fused-weight + bf16-matmul decomposition as the kernel (tight check)."""
    B, N, D = cand.shape
    user = user_embedding.astype(jnp.float32)
    b1u = user @ fused["wu"] + fused["b1"]                      # [B, 4L]
    unorm = jnp.sqrt(jnp.sum(user * user, axis=-1, keepdims=True))
    uhat = user / jnp.maximum(unorm, 1e-8)

    cand_lp = cand.astype(jnp.bfloat16)
    cand_f = cand_lp.astype(jnp.float32)
    h = jnp.einsum("bnd,dh->bnh", cand_lp, fused["wc"],
                   preferred_element_type=jnp.float32)
    h = jnp.maximum(h + b1u[:, None, :], 0.0)
    logits = jnp.einsum("bnh,ho->bno", h.astype(fused["w2"].dtype), fused["w2"],
                        preferred_element_type=jnp.float32) + fused["b2"]

    predict = _sigmoid(logits[..., _COL_PREDICT])
    vert = jax.nn.softmax(logits[..., _COL_VERT0:_COL_VERT0 + 15], axis=-1)
    local = _sigmoid(logits[..., _COL_LOCAL])
    pop = jax.nn.softmax(logits[..., _COL_POP0:_COL_POP0 + 4], axis=-1)

    dotp = jnp.sum(uhat[:, None, :] * cand_f, axis=-1)
    nc2 = jnp.sum(cand_f * cand_f, axis=-1)
    i2i = dotp * jax.lax.rsqrt(jnp.maximum(nc2, 1e-16))
    return (predict.squeeze(), vert.squeeze(), local.squeeze(),
            pop.squeeze(), i2i.squeeze())


def _reference_original(user_embedding, cand, params):
    """Unfused f32 math exactly as written in KREDModel.forward."""
    user = jnp.broadcast_to(user_embedding[:, None, :], cand.shape)
    relu = lambda x: jnp.maximum(x, 0.0)
    u_n = jnp.concatenate([user, cand], axis=-1)
    predict = _sigmoid(relu(u_n @ params["mlp1_w"] + params["mlp1_b"])
                       @ params["mlp2_w"] + params["mlp2_b"])
    vert = jax.nn.softmax(relu(cand @ params["vert1_w"] + params["vert1_b"])
                          @ params["vert2_w"] + params["vert2_b"], axis=-1)
    local = _sigmoid(relu(cand @ params["local1_w"] + params["local1_b"])
                     @ params["local2_w"] + params["local2_b"])
    pop = jax.nn.softmax(relu(cand @ params["pop1_w"] + params["pop1_b"])
                         @ params["pop2_w"] + params["pop2_b"], axis=-1)
    i2i = _cosine(user, cand)
    return (predict.squeeze(), vert.squeeze(), local.squeeze(),
            pop.squeeze(), i2i.squeeze())


if __name__ == "__main__":
    key = jax.random.PRNGKey(0)
    k_user, k_cand, k_param = jax.random.split(key, 3)

    B, N = 2, 8                # batch, candidate news per impression
    embedding_dim = 32         # config['model']['embedding_dim']
    layer_dim = 32             # config['model']['layer_dim']

    # TODO(synk): News_embedding / User_modeling (KGAT graph encoders) and the
    # topk_index passthrough are external modules not defined in KRED.py;
    # their dense embedding outputs are modeled as kernel inputs here.
    user_embedding = jax.random.normal(k_user, (B, embedding_dim), jnp.float32)
    candidate_news_embedding = jax.random.normal(
        k_cand, (B, N, embedding_dim), jnp.float32)

    params = init_params(k_param, embedding_dim, layer_dim)
    fused = fuse_params(params, embedding_dim, layer_dim)

    outs = kred_forward(user_embedding, candidate_news_embedding, fused)
    outs = jax.block_until_ready(outs)

    refs_tight = _reference_fused(user_embedding, candidate_news_embedding, fused)
    refs_orig = _reference_original(user_embedding, candidate_news_embedding, params)
    for o, rt, ro in zip(outs, refs_tight, refs_orig):
        assert o.shape == rt.shape == ro.shape, (o.shape, rt.shape, ro.shape)
        # Tight check: kernel vs identical fused/bf16 decomposition in plain JAX.
        assert jnp.allclose(o, rt, atol=2e-5, rtol=2e-5), \
            "kernel vs fused-math reference mismatch"
        # Loose check vs the original unfused f32 math: bf16 matmul inputs with
        # f32 accumulation (mixed precision, per the perf review) round the
        # logits at the ~1e-3 level; outputs are probabilities/cosines in
        # [-1, 1], so 1e-2 absolute tolerance bounds the mixed-precision error.
        assert jnp.allclose(o, ro, atol=1e-2, rtol=1e-2), \
            "kernel vs original (unfused) math mismatch"

    print("KERNEL_OK")
</pallas_src>

<mosaic_0001>
module attributes {stable_mosaic.version = 11 : i64} {
  func.func @_kred_kernel(%arg0: i32, %arg1: memref<16x32xbf16, #tpu.memory_space<vmem>>, %arg2: memref<16x128xf32, #tpu.memory_space<vmem>>, %arg3: memref<16x32xf32, #tpu.memory_space<vmem>>, %arg4: memref<32x128xbf16, #tpu.memory_space<vmem>>, %arg5: memref<128x128xbf16, #tpu.memory_space<vmem>>, %arg6: memref<1x128xf32, #tpu.memory_space<vmem>>, %arg7: memref<16x128xf32, #tpu.memory_space<vmem>>) attributes {dimension_semantics = [#tpu.dimension_semantics<parallel>], iteration_bounds = array<i64: 1>, scalar_prefetch = 0 : i64, scratch_operands = 0 : i64, tpu.core_type = #tpu.core_type<tc>, window_params = [{transform_indices = @transform_0, window_bounds = array<i64: 16, 32>}, {transform_indices = @transform_1, window_bounds = array<i64: 16, 128>}, {transform_indices = @transform_2, window_bounds = array<i64: 16, 32>}, {pipeline_mode = #tpu.pipeline_mode<synchronous>, transform_indices = @transform_3, window_bounds = array<i64: 32, 128>}, {pipeline_mode = #tpu.pipeline_mode<synchronous>, transform_indices = @transform_4, window_bounds = array<i64: 128, 128>}, {pipeline_mode = #tpu.pipeline_mode<synchronous>, transform_indices = @transform_5, window_bounds = array<i64: 1, 128>}, {transform_indices = @transform_6, window_bounds = array<i64: 16, 128>}]} {
    %c0 = arith.constant 0 : index
    %c0_0 = arith.constant 0 : index
    %0 = vector.load %arg1[%c0, %c0_0] : memref<16x32xbf16, #tpu.memory_space<vmem>>, vector<16x32xbf16>
    %1 = arith.extf %0 : vector<16x32xbf16> to vector<16x32xf32>
    %c0_1 = arith.constant 0 : index
    %c0_2 = arith.constant 0 : index
    %2 = vector.load %arg4[%c0_1, %c0_2] : memref<32x128xbf16, #tpu.memory_space<vmem>>, vector<32x128xbf16>
    %cst = arith.constant dense<0.000000e+00> : vector<16x128xf32>
    %3 = tpu.matmul %0, %2, %cst {dimension_numbers = #tpu.dot_dimension_numbers<[1], [0], [0], [1], [0, 0, 1, 1], [], []>} : vector<16x32xbf16>, vector<32x128xbf16>, vector<16x128xf32> -> vector<16x128xf32>
    %c0_3 = arith.constant 0 : index
    %c0_4 = arith.constant 0 : index
    %4 = vector.load %arg2[%c0_3, %c0_4] : memref<16x128xf32, #tpu.memory_space<vmem>>, vector<16x128xf32>
    %5 = arith.addf %3, %4 : vector<16x128xf32>
    %cst_5 = arith.constant 0.000000e+00 : f32
    %6 = vector.broadcast %cst_5 : f32 to vector<16x128xf32>
    %7 = arith.maximumf %5, %6 : vector<16x128xf32>
    %8 = arith.truncf %7 : vector<16x128xf32> to vector<16x128xbf16>
    %c0_6 = arith.constant 0 : index
    %c0_7 = arith.constant 0 : index
    %9 = vector.load %arg5[%c0_6, %c0_7] : memref<128x128xbf16, #tpu.memory_space<vmem>>, vector<128x128xbf16>
    %cst_8 = arith.constant dense<0.000000e+00> : vector<16x128xf32>
    %10 = tpu.matmul %8, %9, %cst_8 {dimension_numbers = #tpu.dot_dimension_numbers<[1], [0], [0], [1], [0, 0, 1, 1], [], []>} : vector<16x128xbf16>, vector<128x128xbf16>, vector<16x128xf32> -> vector<16x128xf32>
    %c0_9 = arith.constant 0 : index
    %c0_10 = arith.constant 0 : index
    %11 = vector.load %arg6[%c0_9, %c0_10] : memref<1x128xf32, #tpu.memory_space<vmem>>, vector<1x128xf32>
    %12 = vector.broadcast %11 : vector<1x128xf32> to vector<16x128xf32>
    %13 = arith.addf %10, %12 : vector<16x128xf32>
    %14 = tpu.iota {dimensions = array<i32: 1>} : vector<1x128xi32>
    %c0_i32 = arith.constant 0 : i32
    %15 = vector.broadcast %c0_i32 : i32 to vector<1x128xi32>
    %16 = arith.cmpi eq, %14, %15 : vector<1x128xi32>
    %c16_i32 = arith.constant 16 : i32
    %17 = vector.broadcast %c16_i32 : i32 to vector<1x128xi32>
    %18 = arith.cmpi eq, %14, %17 : vector<1x128xi32>
    %19 = arith.ori %16, %18 : vector<1x128xi1>
    %c1_i32 = arith.constant 1 : i32
    %20 = vector.broadcast %c1_i32 : i32 to vector<1x128xi32>
    %21 = arith.cmpi sge, %14, %20 : vector<1x128xi32>
    %c16_i32_11 = arith.constant 16 : i32
    %22 = vector.broadcast %c16_i32_11 : i32 to vector<1x128xi32>
    %23 = arith.cmpi slt, %14, %22 : vector<1x128xi32>
    %24 = arith.andi %21, %23 : vector<1x128xi1>
    %c17_i32 = arith.constant 17 : i32
    %25 = vector.broadcast %c17_i32 : i32 to vector<1x128xi32>
    %26 = arith.cmpi sge, %14, %25 : vector<1x128xi32>
    %c21_i32 = arith.constant 21 : i32
    %27 = vector.broadcast %c21_i32 : i32 to vector<1x128xi32>
    %28 = arith.cmpi slt, %14, %27 : vector<1x128xi32>
    %29 = arith.andi %26, %28 : vector<1x128xi1>
    %30 = arith.ori %24, %29 : vector<1x128xi1>
    %31 = arith.ori %19, %30 : vector<1x128xi1>
    %c21_i32_12 = arith.constant 21 : i32
    %32 = vector.broadcast %c21_i32_12 : i32 to vector<1x128xi32>
    %33 = arith.cmpi eq, %14, %32 : vector<1x128xi32>
    %cst_13 = arith.constant 0xFF800000 : f32
    %34 = vector.shape_cast %24 : vector<1x128xi1> to vector<1x128xi1>
    %35 = vector.broadcast %34 : vector<1x128xi1> to vector<16x128xi1>
    %36 = vector.broadcast %cst_13 : f32 to vector<16x128xf32>
    %37 = arith.select %35, %13, %36 : vector<16x128xi1>, vector<16x128xf32>
    %cst_14 = arith.constant dense<0xFF800000> : vector<16xf32>
    %38 = vector.multi_reduction <maximumf>, %37, %cst_14 [1] : vector<16x128xf32> to vector<16xf32>
    %39 = vector.shape_cast %38 : vector<16xf32> to vector<16x1xf32>
    %cst_15 = arith.constant 0xFF800000 : f32
    %40 = vector.shape_cast %29 : vector<1x128xi1> to vector<1x128xi1>
    %41 = vector.broadcast %40 : vector<1x128xi1> to vector<16x128xi1>
    %42 = vector.broadcast %cst_15 : f32 to vector<16x128xf32>
    %43 = arith.select %41, %13, %42 : vector<16x128xi1>, vector<16x128xf32>
    %cst_16 = arith.constant dense<0xFF800000> : vector<16xf32>
    %44 = vector.multi_reduction <maximumf>, %43, %cst_16 [1] : vector<16x128xf32> to vector<16xf32>
    %45 = vector.shape_cast %44 : vector<16xf32> to vector<16x1xf32>
    %46 = vector.shape_cast %24 : vector<1x128xi1> to vector<1x128xi1>
    %47 = vector.broadcast %46 : vector<1x128xi1> to vector<16x128xi1>
    %48 = vector.shape_cast %39 : vector<16x1xf32> to vector<16x1xf32>
    %49 = vector.broadcast %48 : vector<16x1xf32> to vector<16x128xf32>
    %50 = vector.shape_cast %45 : vector<16x1xf32> to vector<16x1xf32>
    %51 = vector.broadcast %50 : vector<16x1xf32> to vector<16x128xf32>
    %52 = arith.select %47, %49, %51 : vector<16x128xi1>, vector<16x128xf32>
    %cst_17 = arith.constant 0.000000e+00 : f32
    %53 = vector.broadcast %cst_17 : f32 to vector<16x128xf32>
    %54 = arith.subf %53, %13 : vector<16x128xf32>
    %55 = arith.subf %13, %52 : vector<16x128xf32>
    %cst_18 = arith.constant 0xFF800000 : f32
    %56 = vector.shape_cast %30 : vector<1x128xi1> to vector<1x128xi1>
    %57 = vector.broadcast %56 : vector<1x128xi1> to vector<16x128xi1>
    %58 = vector.broadcast %cst_18 : f32 to vector<16x128xf32>
    %59 = arith.select %57, %55, %58 : vector<16x128xi1>, vector<16x128xf32>
    %60 = vector.shape_cast %19 : vector<1x128xi1> to vector<1x128xi1>
    %61 = vector.broadcast %60 : vector<1x128xi1> to vector<16x128xi1>
    %62 = arith.select %61, %54, %59 : vector<16x128xi1>, vector<16x128xf32>
    %63 = math.exp %62 : vector<16x128xf32>
    %cst_19 = arith.constant 0.000000e+00 : f32
    %64 = vector.shape_cast %24 : vector<1x128xi1> to vector<1x128xi1>
    %65 = vector.broadcast %64 : vector<1x128xi1> to vector<16x128xi1>
    %66 = vector.broadcast %cst_19 : f32 to vector<16x128xf32>
    %67 = arith.select %65, %63, %66 : vector<16x128xi1>, vector<16x128xf32>
    %cst_20 = arith.constant dense<0.000000e+00> : vector<16xf32>
    %68 = vector.multi_reduction <add>, %67, %cst_20 [1] : vector<16x128xf32> to vector<16xf32>
    %69 = vector.shape_cast %68 : vector<16xf32> to vector<16x1xf32>
    %cst_21 = arith.constant 0.000000e+00 : f32
    %70 = vector.shape_cast %29 : vector<1x128xi1> to vector<1x128xi1>
    %71 = vector.broadcast %70 : vector<1x128xi1> to vector<16x128xi1>
    %72 = vector.broadcast %cst_21 : f32 to vector<16x128xf32>
    %73 = arith.select %71, %63, %72 : vector<16x128xi1>, vector<16x128xf32>
    %cst_22 = arith.constant dense<0.000000e+00> : vector<16xf32>
    %74 = vector.multi_reduction <add>, %73, %cst_22 [1] : vector<16x128xf32> to vector<16xf32>
    %75 = vector.shape_cast %74 : vector<16xf32> to vector<16x1xf32>
    %cst_23 = arith.constant 1.000000e+00 : f32
    %76 = vector.broadcast %cst_23 : f32 to vector<16x128xf32>
    %77 = arith.addf %76, %63 : vector<16x128xf32>
    %78 = vector.shape_cast %24 : vector<1x128xi1> to vector<1x128xi1>
    %79 = vector.broadcast %78 : vector<1x128xi1> to vector<16x128xi1>
    %80 = vector.shape_cast %69 : vector<16x1xf32> to vector<16x1xf32>
    %81 = vector.broadcast %80 : vector<16x1xf32> to vector<16x128xf32>
    %82 = vector.shape_cast %75 : vector<16x1xf32> to vector<16x1xf32>
    %83 = vector.broadcast %82 : vector<16x1xf32> to vector<16x128xf32>
    %84 = arith.select %79, %81, %83 : vector<16x128xi1>, vector<16x128xf32>
    %85 = vector.shape_cast %19 : vector<1x128xi1> to vector<1x128xi1>
    %86 = vector.broadcast %85 : vector<1x128xi1> to vector<16x128xi1>
    %87 = arith.select %86, %77, %84 : vector<16x128xi1>, vector<16x128xf32>
    %cst_24 = arith.constant 1.000000e+00 : f32
    %88 = vector.broadcast %cst_24 : f32 to vector<16x128xf32>
    %89 = arith.divf %88, %87 : vector<16x128xf32>
    %90 = arith.mulf %63, %89 : vector<16x128xf32>
    %91 = vector.shape_cast %19 : vector<1x128xi1> to vector<1x128xi1>
    %92 = vector.broadcast %91 : vector<1x128xi1> to vector<16x128xi1>
    %93 = arith.select %92, %89, %90 : vector<16x128xi1>, vector<16x128xf32>
    %c0_25 = arith.constant 0 : index
    %c0_26 = arith.constant 0 : index
    %94 = vector.load %arg3[%c0_25, %c0_26] : memref<16x32xf32, #tpu.memory_space<vmem>>, vector<16x32xf32>
    %95 = arith.mulf %94, %1 : vector<16x32xf32>
    %cst_27 = arith.constant dense<0.000000e+00> : vector<16xf32>
    %96 = vector.multi_reduction <add>, %95, %cst_27 [1] : vector<16x32xf32> to vector<16xf32>
    %97 = vector.shape_cast %96 : vector<16xf32> to vector<16x1xf32>
    %98 = arith.mulf %1, %1 : vector<16x32xf32>
    %cst_28 = arith.constant dense<0.000000e+00> : vector<16xf32>
    %99 = vector.multi_reduction <add>, %98, %cst_28 [1] : vector<16x32xf32> to vector<16xf32>
    %100 = vector.shape_cast %99 : vector<16xf32> to vector<16x1xf32>
    %cst_29 = arith.constant 1.000000e-16 : f32
    %101 = vector.broadcast %cst_29 : f32 to vector<16x1xf32>
    %102 = arith.maximumf %100, %101 : vector<16x1xf32>
    %103 = math.rsqrt %102 : vector<16x1xf32>
    %104 = arith.mulf %97, %103 : vector<16x1xf32>
    %cst_30 = arith.constant 0.000000e+00 : f32
    %105 = vector.shape_cast %33 : vector<1x128xi1> to vector<1x128xi1>
    %106 = vector.broadcast %105 : vector<1x128xi1> to vector<16x128xi1>
    %107 = vector.shape_cast %104 : vector<16x1xf32> to vector<16x1xf32>
    %108 = vector.broadcast %107 : vector<16x1xf32> to vector<16x128xf32>
    %109 = vector.broadcast %cst_30 : f32 to vector<16x128xf32>
    %110 = arith.select %106, %108, %109 : vector<16x128xi1>, vector<16x128xf32>
    %111 = vector.shape_cast %31 : vector<1x128xi1> to vector<1x128xi1>
    %112 = vector.broadcast %111 : vector<1x128xi1> to vector<16x128xi1>
    %113 = arith.select %112, %93, %110 : vector<16x128xi1>, vector<16x128xf32>
    %c0_31 = arith.constant 0 : index
    %c0_32 = arith.constant 0 : index
    %114 = vector.load %arg7[%c0_31, %c0_32] : memref<16x128xf32, #tpu.memory_space<vmem>>, vector<16x128xf32>
    tpu.vector_store %arg7[%c0_31, %c0_32], %113 {strides = array<i32>} : memref<16x128xf32, #tpu.memory_space<vmem>>, vector<16x128xf32>,
    return
  }
  func.func @transform_0(%arg0: i32) -> (i32, i32) {
    %c0_i32 = arith.constant 0 : i32
    %c0_i32_0 = arith.constant 0 : i32
    return %arg0, %c0_i32 : i32, i32
  }
  func.func @transform_1(%arg0: i32) -> (i32, i32) {
    %c0_i32 = arith.constant 0 : i32
    %c0_i32_0 = arith.constant 0 : i32
    return %arg0, %c0_i32 : i32, i32
  }
  func.func @transform_2(%arg0: i32) -> (i32, i32) {
    %c0_i32 = arith.constant 0 : i32
    %c0_i32_0 = arith.constant 0 : i32
    return %arg0, %c0_i32 : i32, i32
  }
  func.func @transform_3(%arg0: i32) -> (i32, i32) {
    %c0_i32 = arith.constant 0 : i32
    %c0_i32_0 = arith.constant 0 : i32
    %c0_i32_1 = arith.constant 0 : i32
    return %c0_i32, %c0_i32_0 : i32, i32
  }
  func.func @transform_4(%arg0: i32) -> (i32, i32) {
    %c0_i32 = arith.constant 0 : i32
    %c0_i32_0 = arith.constant 0 : i32
    %c0_i32_1 = arith.constant 0 : i32
    return %c0_i32, %c0_i32_0 : i32, i32
  }
  func.func @transform_5(%arg0: i32) -> (i32, i32) {
    %c0_i32 = arith.constant 0 : i32
    %c0_i32_0 = arith.constant 0 : i32
    %c0_i32_1 = arith.constant 0 : i32
    return %c0_i32, %c0_i32_0 : i32, i32
  }
  func.func @transform_6(%arg0: i32) -> (i32, i32) {
    %c0_i32 = arith.constant 0 : i32
    %c0_i32_0 = arith.constant 0 : i32
    return %arg0, %c0_i32 : i32, i32
  }
}

</mosaic_0001>

<bundles_post_ra>
// kernel: kred_forward.1
= control target key start
LH: loop header
LB: loop body
LE: loop exit
PB: predicated region body
PF: predicated region fallthrough
CT: control target
= control target key end

     0   :  { %v402_v0 = vmov 0.0   ;;  %vm403_vm0 = vmmov 0   ;;  %vm51_vm1 = vcmask 261120   ;;  %v211_v23 = vlaneseq  ;;  %s576_s3 = inlined_call_operand.vmem [shape: bf16[32,128], index: 3, kind: input, shape index: {}]   ;;  %s577_s0 = inlined_call_operand.vmem [shape: bf16[16,32], index: 0, kind: input, shape index: {}]   ;;  %s578_s4 = inlined_call_operand.vmem [shape: bf16[128,128], index: 4, kind: input, shape index: {}]   ;;  %s579_s1 = inlined_call_operand.vmem [shape: f32[16,128], index: 1, kind: input, shape index: {}]   ;;  %s580_s5 = inlined_call_operand.vmem [shape: f32[1,128], index: 5, kind: input, shape index: {}]   ;;  %s581_s2 = inlined_call_operand.vmem [shape: f32[16,32], index: 2, kind: input, shape index: {}]   ;;  %s582_s6 = inlined_call_operand.vmem [shape: f32[16,128], index: 6, kind: output, shape index: {}]  }
   0x1   :  { %348 = vmatprep.subr.bf16.mxu0 %v402_v0  ;;  %v378_v1 = vld [vmem:[%s576_s3] sm:$0xff]   ;;  %352 = vmatprep.mubr.msk.bf16.mxu0 %vm403_vm0, %v402_v0  ;;  %v379_v2 = vld [vmem:[%s576_s3 + $0x8] sm:$0xff]   ;;  %v383_v6 = vld [vmem:[%s578_s4 + $0x10] sm:$0xff]  }
   0x2   :  { %356 = vmatprep.subr.bf16.mxu1 %v402_v0  ;;  %372 = vmatprep.mubr.msk.bf16.mxu1 %vm403_vm0, %v402_v0  ;;  %v448_v3 = vld [vmem:[%s577_s0] sm:$0xff]   ;;  %v382_v5 = vld [vmem:[%s578_s4 + $0x8] sm:$0xff]   ;;  %v384_v7 = vld [vmem:[%s578_s4 + $0x18] sm:$0xff]   ;;  %v482_v24 = vand.u32 127, %v211_v23 }
   0x3   :  { %349 = vmatpush3.bf16.msra.mxu0 %v378_v1  ;;  %v381_v4 = vld [vmem:[%s578_s4] sm:$0xff]   ;;  %v386_v9 = vld [vmem:[%s578_s4 + $0x28] sm:$0xff]   ;;  %v387_v10 = vld [vmem:[%s578_s4 + $0x30] sm:$0xff]   ;;  %v26_v56 = vunpack.c.l.bf16 %v448_v3  ;;  %v27_v60 = vunpack.c.h.bf16 %v448_v3 }
   0x4   :  { %350 = vmatprep.subr.bf16.mxu0 %v402_v0  ;;  %357 = vmatpush3.bf16.msra.mxu1 %v381_v4  ;;  %v385_v8 = vld [vmem:[%s578_s4 + $0x20] sm:$0xff]   ;;  %v388_v11 = vld [vmem:[%s578_s4 + $0x38] sm:$0xff]   ;;  %v33_v14 = vld [vmem:[%s579_s1 + $0x8] sm:$0xff]  ;;  %vm219_vm2 = vcmp.ge.s32.totalorder %v482_v24, 17  ;;  %vm220_vm3 = vcmp.lt.s32.totalorder %v482_v24, 21  ;;  %vm216_vm4 = vcmp.ge.s32.totalorder %v482_v24, 1 }
   0x5   :  { %358 = vmatprep.subr.bf16.mxu1 %v402_v0  ;;  %v32_v12 = vld [vmem:[%s579_s1] sm:$0xff]  ;;  %vm217_vm5 = vcmp.lt.s32.totalorder %v482_v24, 16  ;;  %vm491_vm6 = vmand %vm219_vm2, %vm220_vm3  ;;  %vm213_vm8 = vcmp.eq.s32.totalorder %v482_v24, 0  ;;  %vm214_vm9 = vcmp.eq.s32.totalorder %v482_v24, 16  ;;  %v295_v59 = vmul.f32 %v26_v56, %v26_v56 }
   0x6   :  { %v327_v25 = vld [vmem:[%s580_s5] ss:$0 sm:$0xff]  ;;  %vm495_vm7 = vmand %vm216_vm4, %vm217_vm5  ;;  %vm224_vm12 = vcmp.eq.s32.totalorder %v482_v24, 21 }
   0x7   :  { %351 = vmatpush3.bf16.msra.mxu0 %v379_v2  ;;  %vm513_vm10 = vmor %vm495_vm7, %vm491_vm6  ;;  %v285_v62 = vld [vmem:[%s581_s2] sm:$0xff]  ;;  %v297_v1 = vsel %vm51_vm1, %v295_v59, 0.0  ;;  %v296_v2 = vmul.f32 %v27_v60, %v27_v60 }
   0x8   :  { %359 = vmatpush3.bf16.msra.mxu1 %v382_v5  ;;  %vm519_vm11 = vmor %vm213_vm8, %vm214_vm9  ;;  %v287_v4 = vmul.f32 %v285_v62, %v26_v56 }
   0x9   :  { %360 = vmatprep.subr.bf16.mxu1 %v402_v0  ;;  %vm223_vm13 = vmor %vm519_vm11, %vm513_vm10 }
   0xa   :  { %353 = vmatmul.mubr.msk.bf16.vlgmr.msra.gmra.mrb[0].mxu0 %vm51_vm1, %v448_v3  ;;  %v286_v3 = vld [vmem:[%s581_s2 + $0x8] sm:$0xff] }
   0xc   :  { %361 = vmatpush3.bf16.msra.mxu1 %v383_v6  ;;  %v300_v6 = vsel %vm51_vm1, %v296_v2, 0.0 }
   0xd   :  { %362 = vmatprep.subr.bf16.mxu1 %v402_v0 }
  0x10   :  { %363 = vmatpush3.bf16.msra.mxu1 %v384_v7  ;;  %v289_v7 = vsel %vm51_vm1, %v287_v4, 0.0 }
  0x11   :  { %364 = vmatprep.subr.bf16.mxu1 %v402_v0 }
  0x14   :  { %365 = vmatpush3.bf16.msra.mxu1 %v385_v8  ;;  %v288_v8 = vmul.f32 %v286_v3, %v27_v60 }
  0x15   :  { %366 = vmatprep.subr.bf16.mxu1 %v402_v0 }
  0x18   :  { %367 = vmatpush3.bf16.msra.mxu1 %v386_v9  ;;  %v292_v9 = vsel %vm51_vm1, %v288_v8, 0.0 }
  0x19   :  { %368 = vmatprep.subr.bf16.mxu1 %v402_v0 }
  0x1c   :  { %369 = vmatpush3.bf16.msra.mxu1 %v387_v10 }
  0x1d   :  { %370 = vmatprep.subr.bf16.mxu1 %v402_v0 }
  0x20   :  { %371 = vmatpush3.bf16.msra.mxu1 %v388_v11 }
  0xdd   :  { %v89_v13 = vpop.f32.mrb[0].mxu0 }
  0xde   :  { %v90_v15 = vadd.f32 %v89_v13, %v32_v12  ;;  %v354_v16 = vpop.f32.mrb[1].mxu0 }
  0xdf   :  { %v92_v17 = vpop.f32.mrb[2].mxu0 }
  0xe0   :  { %v93_v18 = vadd.f32 %v92_v17, %v33_v14  ;;  %v355_v19 = vpop.f32.mrb[3].mxu0  ;;  %v96_v20 = vmax.f32 %v90_v15, 0.0 }
  0xe2   :  { %v97_v21 = vmax.f32 %v93_v18, 0.0 }
  0xe4   :  { %v98_v22 = vpack.c.bf16 %v97_v21, %v96_v20 }
  0xe6   :  { %373 = vmatmul.mubr.bf16.vlgmr.msra.gmra.mrb[0].mxu1 %v98_v22 }
 0x1b9   :  { %v204_v27 = vpop.f32.mrb[0].mxu1 }
 0x1ba   :  { %v205_v29 = vadd.f32 %v327_v25, %v204_v27  ;;  %v374_v30 = vpop.f32.mrb[1].mxu1 }
 0x1bb   :  { %v207_v31 = vpop.f32.mrb[2].mxu1 }
 0x1bc   :  { %v208_v32 = vadd.f32 %v327_v25, %v207_v31  ;;  %v375_v33 = vpop.f32.mrb[3].mxu1  ;;  %v235_v34 = vsel %vm491_vm6, %v205_v29, -inf  ;;  %v227_v35 = vsel %vm495_vm7, %v205_v29, -inf  ;;  %v243_v44 = vsub.f32 0.0, %v205_v29 }
 0x1bd   :  { %237 = vmax.xlane.f32.xlu1 %v235_v34  ;;  %229 = vmax.xlane.f32.xlu0 %v227_v35 }
 0x1be   :  { %v236_v36 = vsel %vm491_vm6, %v208_v32, -inf  ;;  %v228_v37 = vsel %vm495_vm7, %v208_v32, -inf  ;;  %v244_v52 = vsub.f32 0.0, %v208_v32 }
 0x1c1   :  { %239 = vmax.xlane.f32.xlu1 %v236_v36  ;;  %231 = vmax.xlane.f32.xlu0 %v228_v37 }
 0x24a   :  { %v238_v38 = vpop.xlane.xlu1 %237  ;;  %v230_v39 = vpop.xlane.xlu0 %229 }
 0x24b   :  { %v241_v41 = vsel %vm495_vm7, %v230_v39, %v238_v38 }
 0x24c   :  { %v245_v43 = vsub.f32 %v205_v29, %v241_v41 }
 0x24e   :  { %v249_v45 = vsel %vm513_vm10, %v245_v43, -inf  ;;  %v240_v46 = vpop.xlane.xlu1 %239  ;;  %v232_v47 = vpop.xlane.xlu0 %231 }
 0x24f   :  { %v253_v48 = vsel %vm519_vm11, %v243_v44, %v249_v45  ;;  %v242_v49 = vsel %vm495_vm7, %v232_v47, %v240_v46 }
 0x250   :  { %v255_v50 = vmul.f32 1.442695, %v253_v48  ;;  %v246_v51 = vsub.f32 %v208_v32, %v242_v49 }
 0x252   :  { %390 = vpow2.f32 %v255_v50  ;;  %v250_v53 = vsel %vm513_vm10, %v246_v51, -inf }
 0x253   :  { %v254_v54 = vsel %vm519_vm11, %v244_v52, %v250_v53 }
 0x254   :  { %v257_v55 = vmul.f32 1.442695, %v254_v54 }
 0x256   :  { %392 = vpow2.f32 %v257_v55 }
 0x25c   :  { %v391_v57 = vpop.eup %390 }
 0x25d   :  { %v259_v58 = vsel %vm495_vm7, %v391_v57, 0.0  ;;  %v265_v63 = vsel %vm491_vm6, %v391_v57, 0.0  ;;  %v271_v12 = vadd.f32 1.0, %v391_v57 }
 0x25e   :  { %261 = vadd.xlane.f32.xlu0 %v259_v58 }
 0x260   :  { %v393_v61 = vpop.eup %392 }
 0x261   :  { %v260_v0 = vsel %vm495_vm7, %v393_v61, 0.0  ;;  %v266_v5 = vsel %vm491_vm6, %v393_v61, 0.0  ;;  %v272_v16 = vadd.f32 1.0, %v393_v61 }
 0x262   :  { %267 = vadd.xlane.f32.xlu0 %v265_v63  ;;  %263 = vadd.xlane.f32.xlu1 %v260_v0 }
 0x266   :  { %269 = vadd.xlane.f32.xlu1 %v266_v5  ;;  %298 = vadd.xlane.f32.xlu0 %v297_v1 }
 0x26a   :  { %301 = vadd.xlane.f32.xlu1 %v300_v6  ;;  %290 = vadd.xlane.f32.xlu0 %v289_v7 }
 0x26e   :  { %293 = vadd.xlane.f32.xlu1 %v292_v9 }
 0x2eb   :  { %v262_v10 = vpop.xlane.xlu0 %261 }
 0x2ef   :  { %v264_v11 = vpop.xlane.xlu1 %263  ;;  %v268_v13 = vpop.xlane.xlu0 %267 }
 0x2f0   :  { %v273_v14 = vsel %vm495_vm7, %v262_v10, %v268_v13 }
 0x2f1   :  { %v275_v15 = vsel %vm519_vm11, %v271_v12, %v273_v14 }
 0x2f2   :  { %394 = vrcp.f32 %v275_v15 }
 0x2f3   :  { %v270_v17 = vpop.xlane.xlu1 %269  ;;  %v299_v18 = vpop.xlane.xlu0 %298 }
 0x2f4   :  { %v274_v19 = vsel %vm495_vm7, %v264_v11, %v270_v17  ;;  %v303_v20 = vmax.f32 %v299_v18, 1e-16 }
 0x2f5   :  { %v276_v21 = vsel %vm519_vm11, %v272_v16, %v274_v19 }
 0x2f6   :  { %396 = vrcp.f32 %v276_v21 }
 0x2f7   :  { %398 = vrsqrt.f32 %v303_v20  ;;  %v302_v22 = vpop.xlane.xlu1 %301  ;;  %v291_v26 = vpop.xlane.xlu0 %290 }
 0x2f8   :  { %v304_v23 = vmax.f32 %v302_v22, 1e-16 }
 0x2fa   :  { %400 = vrsqrt.f32 %v304_v23 }
 0x2fb   :  { %v294_v31 = vpop.xlane.xlu1 %293 }
 0x2fc   :  { %v395_v25 = vpop.eup %394 }
 0x2fd   :  { %v281_v29 = vmul.f32 %v395_v25, %v391_v57 }
 0x2ff   :  { %v283_v34 = vsel %vm519_vm11, %v395_v25, %v281_v29 }
 0x300   :  { %v397_v27 = vpop.eup %396 }
 0x301   :  { %v399_v30 = vpop.eup %398  ;;  %v282_v32 = vmul.f32 %v397_v27, %v393_v61 }
 0x302   :  { %v307_v28 = vmul.f32 %v399_v30, %v291_v26 }
 0x303   :  { %v284_v24 = vsel %vm519_vm11, %v397_v27, %v282_v32 }
 0x304   :  { %v401_v33 = vpop.eup %400  ;;  %v311_v35 = vsel %vm224_vm12, %v307_v28, 0.0 }
 0x305   :  { %v315_v36 = vsel %vm223_vm13, %v283_v34, %v311_v35  ;;  %v308_v37 = vmul.f32 %v401_v33, %v294_v31 }
 0x306   :  { %317 = vst [vmem:[%s582_s6] sm:$0xff] %v315_v36 }
 0x307   :  { %v312_v38 = vsel %vm224_vm12, %v308_v37, 0.0 }
 0x308   :  { %v316_v39 = vsel %vm223_vm13, %v284_v24, %v312_v38 }
 0x309   :  { %318 = vst [vmem:[%s582_s6 + $0x8] sm:$0xff] %v316_v39 }

</bundles_post_ra>
